<compile_context>
chip_gen: v7x
topology: tpu7x:2x2x1
jax: 0.10.0
libtpu: 0.0.40
codegen_flags: <defaults>
</compile_context>

<pallas_src>
import functools

import jax
import jax.numpy as jnp
from jax.experimental import pallas as pl
from jax.experimental.pallas import tpu as pltpu


def mf_kernel(uid_ref, iid_ref, ufac_ref, ifac_ref, w_ref, b_ref, o_ref):
    tb = uid_ref.shape[0]                 # rows in this batch tile
    n_users = ufac_ref.shape[0]
    n_items = ifac_ref.shape[0]

    uid = uid_ref[...]                    # (TB, 1) int32
    iid = iid_ref[...]                    # (TB, 1) int32

    # One-hot gather of user/item factor rows from the VMEM-resident tables.
    u_onehot = jnp.where(
        uid == jax.lax.broadcasted_iota(jnp.int32, (tb, n_users), 1), 1.0, 0.0)
    i_onehot = jnp.where(
        iid == jax.lax.broadcasted_iota(jnp.int32, (tb, n_items), 1), 1.0, 0.0)
    u = jnp.dot(u_onehot, ufac_ref[...],
                preferred_element_type=jnp.float32)            # (TB, F)
    it = jnp.dot(i_onehot, ifac_ref[...],
                 preferred_element_type=jnp.float32)           # (TB, F)

    # Elementwise product (VPU).
    prod = u * it                                              # (TB, F)

    # Linear(F -> 1): contract over F, producing a lane-dense (1, TB) row.
    pred = jnp.einsum("xf,bf->xb", w_ref[...], prod,
                      preferred_element_type=jnp.float32)      # (1, TB)

    # Bias (SMEM scalar) + ReLU.
    o_ref[...] = jnp.maximum(pred + b_ref[0], 0.0)


@functools.partial(jax.jit, static_argnames=("tb",))
def mf_mse_forward(user_ids, item_ids, user_factors, item_factors, w, b,
                   *, tb=256):
    """user_ids/item_ids: int [B]; user_factors: [n_users, F];
    item_factors: [n_items, F]; w: [1, F] (torch Linear weight); b: [1].
    Returns f32 [B, 1]."""
    B = user_ids.shape[0]
    n_users, F = user_factors.shape
    n_items, _ = item_factors.shape

    num_tiles = pl.cdiv(B, tb)
    b_pad = num_tiles * tb

    # Clamp ids (guards the in-kernel gather) and pad batch to a tile multiple.
    uid = jnp.clip(user_ids.astype(jnp.int32), 0, n_users - 1)
    iid = jnp.clip(item_ids.astype(jnp.int32), 0, n_items - 1)
    uid = jnp.pad(uid, (0, b_pad - B)).reshape(b_pad, 1)
    iid = jnp.pad(iid, (0, b_pad - B)).reshape(b_pad, 1)

    w_row = w.reshape(1, F).astype(jnp.float32)
    bias = b.reshape(1).astype(jnp.float32)

    cost = pl.CostEstimate(
        flops=int(2 * b_pad * F * (n_users + n_items + 1) + b_pad * F),
        transcendentals=0,
        bytes_accessed=int(4 * (3 * b_pad + (n_users + n_items + 1) * F + 1)),
    )

    out = pl.pallas_call(
        mf_kernel,
        out_shape=jax.ShapeDtypeStruct((num_tiles, tb), jnp.float32),
        grid=(num_tiles,),
        in_specs=[
            pl.BlockSpec((tb, 1), lambda t: (t, 0)),            # user ids
            pl.BlockSpec((tb, 1), lambda t: (t, 0)),            # item ids
            pl.BlockSpec((n_users, F), lambda t: (0, 0)),       # USER_factors
            pl.BlockSpec((n_items, F), lambda t: (0, 0)),       # ITEM_factors
            pl.BlockSpec((1, F), lambda t: (0, 0)),             # Linear weight
            pl.BlockSpec(memory_space=pltpu.MemorySpace.SMEM),  # bias scalar
        ],
        out_specs=pl.BlockSpec((1, tb), lambda t: (t, 0)),
        compiler_params=pltpu.CompilerParams(
            dimension_semantics=("parallel",)),
        cost_estimate=cost,
    )(uid, iid, user_factors.astype(jnp.float32),
      item_factors.astype(jnp.float32), w_row, bias)

    # (num_tiles, TB) lane-dense slab -> (B, 1) like torch's output.
    return out.reshape(b_pad, 1)[:B]


if __name__ == "__main__":
    # Module hyper-parameters (small, consistent with the PyTorch __init__).
    n_users, n_items, n_factors = 64, 48, 128
    batch = 8

    key = jax.random.PRNGKey(0)
    k_u, k_i, k_w, k_b, k_uid, k_iid = jax.random.split(key, 6)

    # Deterministic synthetic parameters (stand in for nn.Embedding/nn.Linear).
    user_factors = jax.random.normal(k_u, (n_users, n_factors), dtype=jnp.float32)
    item_factors = jax.random.normal(k_i, (n_items, n_factors), dtype=jnp.float32)
    bound = 1.0 / jnp.sqrt(n_factors)
    w = jax.random.uniform(k_w, (1, n_factors), jnp.float32, -bound, bound)
    b = jax.random.uniform(k_b, (1,), jnp.float32, -bound, bound)

    # Example coordinates (index vectors).
    user_ids = jax.random.randint(k_uid, (batch,), 0, n_users, dtype=jnp.int32)
    item_ids = jax.random.randint(k_iid, (batch,), 0, n_items, dtype=jnp.int32)

    out = mf_mse_forward(user_ids, item_ids, user_factors, item_factors, w, b)
    out = jax.block_until_ready(out)

    # Pure-JAX reference of the PyTorch forward.
    u = user_factors[user_ids]
    it = item_factors[item_ids]
    ref = jnp.maximum(jnp.sum(u * it * w, axis=-1, keepdims=True) + b, 0.0)

    assert out.shape == (batch, 1), out.shape
    assert jnp.allclose(out, ref, atol=1e-4, rtol=1e-4), (out, ref)
    print("KERNEL_OK")
</pallas_src>

<mosaic_0001>
module attributes {stable_mosaic.version = 11 : i64} {
  func.func @mf_kernel(%arg0: i32, %arg1: memref<256x1xi32, #tpu.memory_space<vmem>>, %arg2: memref<256x1xi32, #tpu.memory_space<vmem>>, %arg3: memref<64x128xf32, #tpu.memory_space<vmem>>, %arg4: memref<48x128xf32, #tpu.memory_space<vmem>>, %arg5: memref<1x128xf32, #tpu.memory_space<vmem>>, %arg6: memref<1xf32, #tpu.memory_space<smem>>, %arg7: memref<1x256xf32, #tpu.memory_space<vmem>>) attributes {dimension_semantics = [#tpu.dimension_semantics<parallel>], iteration_bounds = array<i64: 1>, scalar_prefetch = 0 : i64, scratch_operands = 0 : i64, tpu.core_type = #tpu.core_type<tc>, window_params = [{transform_indices = @transform_0, window_bounds = array<i64: 256, 1>}, {transform_indices = @transform_1, window_bounds = array<i64: 256, 1>}, {pipeline_mode = #tpu.pipeline_mode<synchronous>, transform_indices = @transform_2, window_bounds = array<i64: 64, 128>}, {pipeline_mode = #tpu.pipeline_mode<synchronous>, transform_indices = @transform_3, window_bounds = array<i64: 48, 128>}, {pipeline_mode = #tpu.pipeline_mode<synchronous>, transform_indices = @transform_4, window_bounds = array<i64: 1, 128>}, {transform_indices = @transform_5, window_bounds = array<i64: 1>}, {transform_indices = @transform_6, window_bounds = array<i64: 1, 256>}]} {
    %c0 = arith.constant 0 : index
    %c0_0 = arith.constant 0 : index
    %0 = vector.load %arg1[%c0, %c0_0] : memref<256x1xi32, #tpu.memory_space<vmem>>, vector<256x1xi32>
    %c0_1 = arith.constant 0 : index
    %c0_2 = arith.constant 0 : index
    %1 = vector.load %arg2[%c0_1, %c0_2] : memref<256x1xi32, #tpu.memory_space<vmem>>, vector<256x1xi32>
    %2 = tpu.iota {dimensions = array<i32: 1>} : vector<256x64xi32>
    %3 = vector.broadcast %0 : vector<256x1xi32> to vector<256x64xi32>
    %4 = arith.cmpi eq, %3, %2 : vector<256x64xi32>
    %cst = arith.constant 1.000000e+00 : f32
    %cst_3 = arith.constant 0.000000e+00 : f32
    %5 = vector.broadcast %cst : f32 to vector<256x64xf32>
    %6 = vector.broadcast %cst_3 : f32 to vector<256x64xf32>
    %7 = arith.select %4, %5, %6 : vector<256x64xi1>, vector<256x64xf32>
    %8 = tpu.iota {dimensions = array<i32: 1>} : vector<256x48xi32>
    %9 = vector.broadcast %1 : vector<256x1xi32> to vector<256x48xi32>
    %10 = arith.cmpi eq, %9, %8 : vector<256x48xi32>
    %cst_4 = arith.constant 1.000000e+00 : f32
    %cst_5 = arith.constant 0.000000e+00 : f32
    %11 = vector.broadcast %cst_4 : f32 to vector<256x48xf32>
    %12 = vector.broadcast %cst_5 : f32 to vector<256x48xf32>
    %13 = arith.select %10, %11, %12 : vector<256x48xi1>, vector<256x48xf32>
    %c0_6 = arith.constant 0 : index
    %c0_7 = arith.constant 0 : index
    %14 = vector.load %arg3[%c0_6, %c0_7] : memref<64x128xf32, #tpu.memory_space<vmem>>, vector<64x128xf32>
    %cst_8 = arith.constant dense<0.000000e+00> : vector<256x128xf32>
    %15 = tpu.matmul %7, %14, %cst_8 {dimension_numbers = #tpu.dot_dimension_numbers<[1], [0], [0], [1], [0, 0, 1, 1], [], []>} : vector<256x64xf32>, vector<64x128xf32>, vector<256x128xf32> -> vector<256x128xf32>
    %c0_9 = arith.constant 0 : index
    %c0_10 = arith.constant 0 : index
    %16 = vector.load %arg4[%c0_9, %c0_10] : memref<48x128xf32, #tpu.memory_space<vmem>>, vector<48x128xf32>
    %cst_11 = arith.constant dense<0.000000e+00> : vector<256x128xf32>
    %17 = tpu.matmul %13, %16, %cst_11 {dimension_numbers = #tpu.dot_dimension_numbers<[1], [0], [0], [1], [0, 0, 1, 1], [], []>} : vector<256x48xf32>, vector<48x128xf32>, vector<256x128xf32> -> vector<256x128xf32>
    %18 = arith.mulf %15, %17 : vector<256x128xf32>
    %c0_12 = arith.constant 0 : index
    %c0_13 = arith.constant 0 : index
    %19 = vector.load %arg5[%c0_12, %c0_13] : memref<1x128xf32, #tpu.memory_space<vmem>>, vector<1x128xf32>
    "tpu.trace_start"() <{level = 10 : i32, message = "xf,bf->xb"}> : () -> ()
    %cst_14 = arith.constant dense<0.000000e+00> : vector<1x256xf32>
    %20 = tpu.matmul %19, %18, %cst_14 {dimension_numbers = #tpu.dot_dimension_numbers<[1], [1], [0], [0], [0, 0, 1, 0], [], []>} : vector<1x128xf32>, vector<256x128xf32>, vector<1x256xf32> -> vector<1x256xf32>
    "tpu.trace_stop"() : () -> ()
    %c0_15 = arith.constant 0 : index
    %21 = memref.load %arg6[%c0_15] : memref<1xf32, #tpu.memory_space<smem>>
    %22 = vector.broadcast %21 : f32 to vector<1x256xf32>
    %23 = arith.addf %20, %22 : vector<1x256xf32>
    %cst_16 = arith.constant 0.000000e+00 : f32
    %24 = vector.broadcast %cst_16 : f32 to vector<1x256xf32>
    %25 = arith.maximumf %23, %24 : vector<1x256xf32>
    %c0_17 = arith.constant 0 : index
    %c0_18 = arith.constant 0 : index
    %26 = vector.load %arg7[%c0_17, %c0_18] : memref<1x256xf32, #tpu.memory_space<vmem>>, vector<1x256xf32>
    tpu.vector_store %arg7[%c0_17, %c0_18], %25 {strides = array<i32>} : memref<1x256xf32, #tpu.memory_space<vmem>>, vector<1x256xf32>,
    return
  }
  func.func @transform_0(%arg0: i32) -> (i32, i32) {
    %c0_i32 = arith.constant 0 : i32
    %c0_i32_0 = arith.constant 0 : i32
    return %arg0, %c0_i32 : i32, i32
  }
  func.func @transform_1(%arg0: i32) -> (i32, i32) {
    %c0_i32 = arith.constant 0 : i32
    %c0_i32_0 = arith.constant 0 : i32
    return %arg0, %c0_i32 : i32, i32
  }
  func.func @transform_2(%arg0: i32) -> (i32, i32) {
    %c0_i32 = arith.constant 0 : i32
    %c0_i32_0 = arith.constant 0 : i32
    %c0_i32_1 = arith.constant 0 : i32
    return %c0_i32, %c0_i32_0 : i32, i32
  }
  func.func @transform_3(%arg0: i32) -> (i32, i32) {
    %c0_i32 = arith.constant 0 : i32
    %c0_i32_0 = arith.constant 0 : i32
    %c0_i32_1 = arith.constant 0 : i32
    return %c0_i32, %c0_i32_0 : i32, i32
  }
  func.func @transform_4(%arg0: i32) -> (i32, i32) {
    %c0_i32 = arith.constant 0 : i32
    %c0_i32_0 = arith.constant 0 : i32
    %c0_i32_1 = arith.constant 0 : i32
    return %c0_i32, %c0_i32_0 : i32, i32
  }
  func.func @transform_5(%arg0: i32) -> i32 {
    %c0_i32 = arith.constant 0 : i32
    %c0_i32_0 = arith.constant 0 : i32
    return %c0_i32 : i32
  }
  func.func @transform_6(%arg0: i32) -> (i32, i32) {
    %c0_i32 = arith.constant 0 : i32
    %c0_i32_0 = arith.constant 0 : i32
    return %arg0, %c0_i32 : i32, i32
  }
}

</mosaic_0001>

<bundles_post_ra>
// kernel: mf_mse_forward.1
= control target key start
LH: loop header
LB: loop body
LE: loop exit
PB: predicated region body
PF: predicated region fallthrough
CT: control target
= control target key end

     0   :  { %v1568_v0 = vmov 0   ;;  %vm418_vm0 = vcmask 523264   ;;  %vm746_vm3 = vcmask 392192   ;;  %s2104_s0 = inlined_call_operand.vmem [shape: s32[256,1], index: 0, kind: input, shape index: {}]   ;;  %s2105_s1 = inlined_call_operand.vmem [shape: s32[256,1], index: 1, kind: input, shape index: {}]   ;;  %s2106_s2 = inlined_call_operand.vmem [shape: f32[64,128], index: 2, kind: input, shape index: {}]   ;;  %s2107_s3 = inlined_call_operand.vmem [shape: f32[48,128], index: 3, kind: input, shape index: {}]   ;;  %s2108_s4 = inlined_call_operand.vmem [shape: f32[1,128], index: 4, kind: input, shape index: {}]   ;;  %s2109_s5 = inlined_call_operand.<no memory space> [shape: f32[1], index: 5, kind: input, shape index: {}]   ;;  %s2110_s6 = inlined_call_operand.vmem [shape: f32[1,256], index: 6, kind: output, shape index: {}]  }
   0x1   :  { %1567 = vset.pattern.permute.xlu1 %v1568_v0  ;;  %1566 = vset.pattern.permute.xlu0 %v1568_v0  ;;  %v25_v1 = vld [vmem:[%s2104_s0 + $0x8] sm:$0xff]  ;;  %v24_v2 = vld [vmem:[%s2104_s0] sm:$0xff]  ;;  %v58_v5 = vld [vmem:[%s2105_s1 + $0x10] sm:$0xff] }
   0x2   :  { %94 = vperm.xlu1 %1567, %v25_v1   ;;  %91 = vperm.xlu0 %1566, %v24_v2   ;;  %v57_v3 = vld [vmem:[%s2105_s1 + $0x8] sm:$0xff]  ;;  %v56_v4 = vld [vmem:[%s2105_s1] sm:$0xff]  ;;  %v26_v6 = vld [vmem:[%s2104_s0 + $0x10] sm:$0xff] }
   0x3   :  { %v59_v7 = vld [vmem:[%s2105_s1 + $0x18] sm:$0xff]  ;;  %v60_v9 = vld [vmem:[%s2105_s1 + $0x20] sm:$0xff]  ;;  %v61_v11 = vld [vmem:[%s2105_s1 + $0x28] sm:$0xff] }
   0x4   :  { %v27_v8 = vld [vmem:[%s2104_s0 + $0x18] sm:$0xff]  ;;  %v28_v10 = vld [vmem:[%s2104_s0 + $0x20] sm:$0xff]  ;;  %v29_v12 = vld [vmem:[%s2104_s0 + $0x28] sm:$0xff] }
   0x5   :  { %v410_v13 = vld [vmem:[%s2106_s2] sm:$0xff]  ;;  %v411_v14 = vld [vmem:[%s2106_s2 + $0x8] sm:$0xff]  ;;  %v412_v16 = vld [vmem:[%s2106_s2 + $0x10] sm:$0xff] }
   0x6   :  { %254 = vperm.xlu1 %1567, %v57_v3   ;;  %251 = vperm.xlu0 %1566, %v56_v4   ;;  %v1503_v15 = vpack.c.bf16 %v411_v14, %v410_v13  ;;  %v62_v17 = vld [vmem:[%s2105_s1 + $0x30] sm:$0xff]  ;;  %v413_v19 = vld [vmem:[%s2106_s2 + $0x18] sm:$0xff]  ;;  %v414_v21 = vld [vmem:[%s2106_s2 + $0x20] sm:$0xff] }
   0x7   :  { %v30_v18 = vld [vmem:[%s2104_s0 + $0x30] sm:$0xff]  ;;  %v1507_v20 = vpack.c.bf16 %v413_v19, %v412_v16  ;;  %v415_v22 = vld [vmem:[%s2106_s2 + $0x28] sm:$0xff]  ;;  %v740_v23 = vld [vmem:[%s2107_s3] sm:$0xff] }
   0x8   :  { %1504 = vmatprep.subr.bf16.mxu0 %v1503_v15  ;;  %v741_v24 = vld [vmem:[%s2107_s3 + $0x8] sm:$0xff]  ;;  %v1511_v25 = vpack.c.bf16 %v415_v22, %v414_v21  ;;  %v416_v27 = vld [vmem:[%s2106_s2 + $0x30] sm:$0xff]  ;;  %v417_v28 = vld [vmem:[%s2106_s2 + $0x38] sm:$0xff] }
   0x9   :  { %1506 = vmatpush3.bf16.msra.mxu0 %v1503_v15  ;;  %v1519_v26 = vpack.c.bf16 %v741_v24, %v740_v23  ;;  %v742_v29 = vld [vmem:[%s2107_s3 + $0x10] sm:$0xff]  ;;  %v743_v30 = vld [vmem:[%s2107_s3 + $0x18] sm:$0xff]  ;;  %v744_v31 = vld [vmem:[%s2107_s3 + $0x20] sm:$0xff]  ;;  %v1515_v36 = vpack.c.bf16 %v417_v28, %v416_v27 }
   0xa   :  { %257 = vperm.xlu1 %1567, %v58_v5   ;;  %97 = vperm.xlu0 %1566, %v26_v6   ;;  %v745_v32 = vld [vmem:[%s2107_s3 + $0x28] sm:$0xff]  ;;  %v63_v33 = vld [vmem:[%s2105_s1 + $0x38] sm:$0xff]  ;;  %v1523_v35 = vpack.c.bf16 %v743_v30, %v742_v29  ;;  %v64_v38 = vld [vmem:[%s2105_s1 + $0x40] sm:$0xff] }
   0xb   :  { %1508 = vmatprep.subr.bf16.mxu0 %v1507_v20  ;;  %v31_v34 = vld [vmem:[%s2104_s0 + $0x38] sm:$0xff]  ;;  %1520 = vmatprep.subr.bf16.mxu1 %v1519_v26  ;;  %v1527_v37 = vpack.c.bf16 %v745_v32, %v744_v31  ;;  %v32_v39 = vld [vmem:[%s2104_s0 + $0x40] sm:$0xff]  ;;  %v65_v40 = vld [vmem:[%s2105_s1 + $0x48] sm:$0xff] }
   0xc   :  { %1522 = vmatpush3.bf16.msra.mxu1 %v1519_v26  ;;  %v33_v41 = vld [vmem:[%s2104_s0 + $0x48] sm:$0xff]  ;;  %v66_v42 = vld [vmem:[%s2105_s1 + $0x50] sm:$0xff]  ;;  %v67_v44 = vld [vmem:[%s2105_s1 + $0x58] sm:$0xff]  ;;  %v1569_v26 = vmov 0.0  }
   0xd   :  { %1510 = vmatpush3.bf16.msra.mxu0 %v1507_v20  ;;  %1524 = vmatprep.subr.bf16.mxu1 %v1523_v35  ;;  %v34_v43 = vld [vmem:[%s2104_s0 + $0x50] sm:$0xff]  ;;  %v35_v45 = vld [vmem:[%s2104_s0 + $0x58] sm:$0xff]  ;;  %v68_v46 = vld [vmem:[%s2105_s1 + $0x60] sm:$0xff]  ;;  %v88_v20 = vlaneseq }
   0xe   :  { %260 = vperm.xlu1 %1567, %v59_v7   ;;  %100 = vperm.xlu0 %1566, %v27_v8   ;;  %v36_v47 = vld [vmem:[%s2104_s0 + $0x60] sm:$0xff]  ;;  %v69_v48 = vld [vmem:[%s2105_s1 + $0x68] sm:$0xff]  ;;  %v70_v50 = vld [vmem:[%s2105_s1 + $0x70] sm:$0xff] }
   0xf   :  { %1512 = vmatprep.subr.bf16.mxu0 %v1511_v25  ;;  %v37_v49 = vld [vmem:[%s2104_s0 + $0x68] sm:$0xff]  ;;  %v38_v51 = vld [vmem:[%s2104_s0 + $0x70] sm:$0xff]  ;;  %v71_v52 = vld [vmem:[%s2105_s1 + $0x78] sm:$0xff]  ;;  %v1841_v23 = vand.u32 127, %v88_v20 }
  0x10   :  { %1526 = vmatpush3.bf16.msra.mxu1 %v1523_v35  ;;  %v39_v53 = vld [vmem:[%s2104_s0 + $0x78] sm:$0xff]  ;;  %v72_v54 = vld [vmem:[%s2105_s1 + $0x80] sm:$0xff]  ;;  %v73_v56 = vld [vmem:[%s2105_s1 + $0x88] sm:$0xff] }
  0x11   :  { %1514 = vmatpush3.bf16.msra.mxu0 %v1511_v25  ;;  %1528 = vmatprep.subr.bf16.mxu1 %v1527_v37  ;;  %v40_v55 = vld [vmem:[%s2104_s0 + $0x80] sm:$0xff]  ;;  %v41_v57 = vld [vmem:[%s2104_s0 + $0x88] sm:$0xff]  ;;  %v74_v58 = vld [vmem:[%s2105_s1 + $0x90] sm:$0xff] }
  0x12   :  { %263 = vperm.xlu1 %1567, %v60_v9   ;;  %103 = vperm.xlu0 %1566, %v28_v10   ;;  %v42_v59 = vld [vmem:[%s2104_s0 + $0x90] sm:$0xff]  ;;  %v75_v60 = vld [vmem:[%s2105_s1 + $0x98] sm:$0xff]  ;;  %v76_v62 = vld [vmem:[%s2105_s1 + $0xa0] sm:$0xff] }
  0x13   :  { %1516 = vmatprep.subr.bf16.mxu0 %v1515_v36  ;;  %v43_v61 = vld [vmem:[%s2104_s0 + $0x98] sm:$0xff]  ;;  %v44_v63 = vld [vmem:[%s2104_s0 + $0xa0] sm:$0xff]  ;;  %v77_v0 = vld [vmem:[%s2105_s1 + $0xa8] sm:$0xff] }
  0x14   :  { %1530 = vmatpush3.bf16.msra.mxu1 %v1527_v37  ;;  %v45_v1 = vld [vmem:[%s2104_s0 + $0xa8] sm:$0xff]  ;;  %v78_v2 = vld [vmem:[%s2105_s1 + $0xb0] sm:$0xff]  ;;  %v79_v4 = vld [vmem:[%s2105_s1 + $0xb8] sm:$0xff] }
  0x15   :  { %1518 = vmatpush3.bf16.msra.mxu0 %v1515_v36  ;;  %v46_v3 = vld [vmem:[%s2104_s0 + $0xb0] sm:$0xff]  ;;  %v47_v5 = vld [vmem:[%s2104_s0 + $0xb8] sm:$0xff]  ;;  %v80_v6 = vld [vmem:[%s2105_s1 + $0xc0] sm:$0xff] }
  0x16   :  { %266 = vperm.xlu1 %1567, %v61_v11   ;;  %106 = vperm.xlu0 %1566, %v29_v12   ;;  %v48_v7 = vld [vmem:[%s2104_s0 + $0xc0] sm:$0xff]  ;;  %v81_v8 = vld [vmem:[%s2105_s1 + $0xc8] sm:$0xff]  ;;  %v82_v10 = vld [vmem:[%s2105_s1 + $0xd0] sm:$0xff] }
  0x17   :  { %v49_v9 = vld [vmem:[%s2104_s0 + $0xc8] sm:$0xff]  ;;  %v50_v11 = vld [vmem:[%s2104_s0 + $0xd0] sm:$0xff]  ;;  %v83_v12 = vld [vmem:[%s2105_s1 + $0xd8] sm:$0xff] }
  0x18   :  { %v51_v13 = vld [vmem:[%s2104_s0 + $0xd8] sm:$0xff]  ;;  %v84_v14 = vld [vmem:[%s2105_s1 + $0xe0] sm:$0xff]  ;;  %v85_v16 = vld [vmem:[%s2105_s1 + $0xe8] sm:$0xff] }
  0x19   :  { %v52_v15 = vld [vmem:[%s2104_s0 + $0xe0] sm:$0xff]  ;;  %v54_v19 = vld [vmem:[%s2104_s0 + $0xf0] sm:$0xff]  ;;  %v87_v21 = vld [vmem:[%s2105_s1 + $0xf8] sm:$0xff] }
  0x1a   :  { %269 = vperm.xlu1 %1567, %v62_v17   ;;  %109 = vperm.xlu0 %1566, %v30_v18   ;;  %v53_v17 = vld [vmem:[%s2104_s0 + $0xe8] sm:$0xff]  ;;  %v86_v18 = vld [vmem:[%s2105_s1 + $0xf0] sm:$0xff]  ;;  %v55_v22 = vld [vmem:[%s2104_s0 + $0xf8] sm:$0xff] }
  0x1e   :  { %272 = vperm.xlu1 %1567, %v63_v33   ;;  %112 = vperm.xlu0 %1566, %v31_v34  }
  0x22   :  { %275 = vperm.xlu1 %1567, %v64_v38   ;;  %115 = vperm.xlu0 %1566, %v32_v39  }
  0x26   :  { %278 = vperm.xlu1 %1567, %v65_v40   ;;  %118 = vperm.xlu0 %1566, %v33_v41  }
  0x2a   :  { %281 = vperm.xlu1 %1567, %v66_v42   ;;  %121 = vperm.xlu0 %1566, %v34_v43  }
  0x2e   :  { %284 = vperm.xlu1 %1567, %v67_v44   ;;  %124 = vperm.xlu0 %1566, %v35_v45  }
  0x32   :  { %287 = vperm.xlu1 %1567, %v68_v46   ;;  %127 = vperm.xlu0 %1566, %v36_v47  }
  0x36   :  { %290 = vperm.xlu1 %1567, %v69_v48   ;;  %130 = vperm.xlu0 %1566, %v37_v49  }
  0x3a   :  { %293 = vperm.xlu1 %1567, %v70_v50   ;;  %133 = vperm.xlu0 %1566, %v38_v51  }
  0x3e   :  { %296 = vperm.xlu1 %1567, %v71_v52   ;;  %136 = vperm.xlu0 %1566, %v39_v53  }
  0x42   :  { %299 = vperm.xlu1 %1567, %v72_v54   ;;  %139 = vperm.xlu0 %1566, %v40_v55  }
  0x46   :  { %302 = vperm.xlu1 %1567, %v73_v56   ;;  %142 = vperm.xlu0 %1566, %v41_v57  }
  0x4a   :  { %305 = vperm.xlu1 %1567, %v74_v58   ;;  %145 = vperm.xlu0 %1566, %v42_v59  }
  0x4e   :  { %308 = vperm.xlu1 %1567, %v75_v60   ;;  %148 = vperm.xlu0 %1566, %v43_v61  }
  0x52   :  { %311 = vperm.xlu1 %1567, %v76_v62   ;;  %151 = vperm.xlu0 %1566, %v44_v63  }
  0x56   :  { %314 = vperm.xlu1 %1567, %v77_v0   ;;  %154 = vperm.xlu0 %1566, %v45_v1  }
  0x5a   :  { %317 = vperm.xlu1 %1567, %v78_v2   ;;  %157 = vperm.xlu0 %1566, %v46_v3  }
  0x5e   :  { %320 = vperm.xlu1 %1567, %v79_v4   ;;  %160 = vperm.xlu0 %1566, %v47_v5  }
  0x62   :  { %323 = vperm.xlu1 %1567, %v80_v6   ;;  %163 = vperm.xlu0 %1566, %v48_v7  }
  0x66   :  { %326 = vperm.xlu1 %1567, %v81_v8   ;;  %166 = vperm.xlu0 %1566, %v49_v9  }
  0x6a   :  { %329 = vperm.xlu1 %1567, %v82_v10   ;;  %169 = vperm.xlu0 %1566, %v50_v11  }
  0x6e   :  { %332 = vperm.xlu1 %1567, %v83_v12   ;;  %172 = vperm.xlu0 %1566, %v51_v13  }
  0x72   :  { %335 = vperm.xlu1 %1567, %v84_v14   ;;  %175 = vperm.xlu0 %1566, %v52_v15  }
  0x76   :  { %338 = vperm.xlu1 %1567, %v85_v16   ;;  %178 = vperm.xlu0 %1566, %v53_v17  }
  0x7a   :  { %341 = vperm.xlu1 %1567, %v86_v18   ;;  %181 = vperm.xlu0 %1566, %v54_v19  }
  0x7e   :  { %344 = vperm.xlu1 %1567, %v87_v21   ;;  %184 = vperm.xlu0 %1566, %v55_v22  }
  0x81   :  { %v95_v24 = vpop.permute.xlu1 %94  ;;  %v92_v25 = vpop.permute.xlu0 %91 }
  0x82   :  { %vm187_vm1 = vcmp.eq.s32.totalorder %v95_v24, %v1841_v23  ;;  %vm186_vm2 = vcmp.eq.s32.totalorder %v92_v25, %v1841_v23 }
  0x83   :  { %v219_v27 = vsel %vm187_vm1, 1.0, %v1569_v26  ;;  %v218_v28 = vsel %vm186_vm2, 1.0, %v1569_v26 }
  0x84   :  { %1395 = vmatprep.mubr.msk.f32.mxu0 %vm418_vm0, %v218_v28 }
  0x85   :  { %v255_v29 = vpop.permute.xlu1 %254  ;;  %1396 = vmatmul.mubr.msk.f32.vlgmr.msra.gmra.mrb[0].mxu0 %vm418_vm0, %v219_v27  ;;  %v252_v30 = vpop.permute.xlu0 %251 }
  0x86   :  { %vm347_vm4 = vcmp.eq.s32.totalorder %v255_v29, %v1841_v23  ;;  %vm346_vm5 = vcmp.eq.s32.totalorder %v252_v30, %v1841_v23 }
  0x87   :  { %v379_v31 = vsel %vm347_vm4, 1.0, %v1569_v26  ;;  %v378_v32 = vsel %vm346_vm5, 1.0, %v1569_v26 }
  0x88   :  { %1455 = vmatprep.mubr.msk.f32.mxu1 %vm746_vm3, %v378_v32 }
  0x89   :  { %v258_v33 = vpop.permute.xlu1 %257  ;;  %1456 = vmatmul.mubr.msk.f32.vlgmr.msra.gmra.mrb[0].mxu1 %vm746_vm3, %v379_v31  ;;  %v98_v34 = vpop.permute.xlu0 %97 }
  0x8a   :  { %vm348_vm6 = vcmp.eq.s32.totalorder %v258_v33, %v1841_v23  ;;  %vm188_vm7 = vcmp.eq.s32.totalorder %v98_v34, %v1841_v23 }
  0x8b   :  { %v380_v35 = vsel %vm348_vm6, 1.0, %v1569_v26  ;;  %v220_v36 = vsel %vm188_vm7, 1.0, %v1569_v26 }
  0x8c   :  { %1398 = vmatprep.mubr.msk.f32.mxu0 %vm418_vm0, %v220_v36  ;;  %1458 = vmatprep.mubr.msk.f32.mxu1 %vm746_vm3, %v380_v35 }
  0x8d   :  { %v261_v37 = vpop.permute.xlu1 %260  ;;  %v101_v38 = vpop.permute.xlu0 %100 }
  0x8e   :  { %vm349_vm8 = vcmp.eq.s32.totalorder %v261_v37, %v1841_v23  ;;  %vm189_vm9 = vcmp.eq.s32.totalorder %v101_v38, %v1841_v23 }
  0x8f   :  { %v381_v39 = vsel %vm349_vm8, 1.0, %v1569_v26  ;;  %v221_v40 = vsel %vm189_vm9, 1.0, %v1569_v26 }
  0x90   :  { %1399 = vmatmul.mubr.msk.f32.gmra.mrb[2].mxu0 %vm418_vm0, %v221_v40  ;;  %1459 = vmatmul.mubr.msk.f32.gmra.mrb[2].mxu1 %vm746_vm3, %v381_v39 }
  0x91   :  { %v264_v41 = vpop.permute.xlu1 %263  ;;  %v104_v42 = vpop.permute.xlu0 %103 }
  0x92   :  { %vm350_vm10 = vcmp.eq.s32.totalorder %v264_v41, %v1841_v23  ;;  %vm190_vm11 = vcmp.eq.s32.totalorder %v104_v42, %v1841_v23 }
  0x93   :  { %v382_v43 = vsel %vm350_vm10, 1.0, %v1569_v26  ;;  %v222_v44 = vsel %vm190_vm11, 1.0, %v1569_v26 }
  0x94   :  { %1401 = vmatprep.mubr.msk.f32.mxu0 %vm418_vm0, %v222_v44  ;;  %1461 = vmatprep.mubr.msk.f32.mxu1 %vm746_vm3, %v382_v43 }
  0x95   :  { %v267_v45 = vpop.permute.xlu1 %266  ;;  %v107_v46 = vpop.permute.xlu0 %106 }
  0x96   :  { %vm351_vm12 = vcmp.eq.s32.totalorder %v267_v45, %v1841_v23  ;;  %vm191_vm13 = vcmp.eq.s32.totalorder %v107_v46, %v1841_v23 }
  0x97   :  { %v383_v47 = vsel %vm351_vm12, 1.0, %v1569_v26  ;;  %v223_v48 = vsel %vm191_vm13, 1.0, %v1569_v26 }
  0x98   :  { %1402 = vmatmul.mubr.msk.f32.gmra.mrb[4].mxu0 %vm418_vm0, %v223_v48  ;;  %1462 = vmatmul.mubr.msk.f32.gmra.mrb[4].mxu1 %vm746_vm3, %v383_v47 }
  0x99   :  { %v270_v49 = vpop.permute.xlu1 %269  ;;  %v110_v50 = vpop.permute.xlu0 %109 }
  0x9a   :  { %vm352_vm14 = vcmp.eq.s32.totalorder %v270_v49, %v1841_v23  ;;  %vm192_vm15 = vcmp.eq.s32.totalorder %v110_v50, %v1841_v23 }
  0x9b   :  { %v384_v51 = vsel %vm352_vm14, 1.0, %v1569_v26  ;;  %v224_v52 = vsel %vm192_vm15, 1.0, %v1569_v26 }
  0x9c   :  { %1404 = vmatprep.mubr.msk.f32.mxu0 %vm418_vm0, %v224_v52  ;;  %1464 = vmatprep.mubr.msk.f32.mxu1 %vm746_vm3, %v384_v51 }
  0x9d   :  { %v273_v53 = vpop.permute.xlu1 %272  ;;  %v113_v54 = vpop.permute.xlu0 %112 }
  0x9e   :  { %vm353_vm1 = vcmp.eq.s32.totalorder %v273_v53, %v1841_v23  ;;  %vm193_vm2 = vcmp.eq.s32.totalorder %v113_v54, %v1841_v23 }
  0x9f   :  { %v385_v55 = vsel %vm353_vm1, 1.0, %v1569_v26  ;;  %v225_v56 = vsel %vm193_vm2, 1.0, %v1569_v26 }
  0xa0   :  { %1405 = vmatmul.mubr.msk.f32.gmra.mrb[6].mxu0 %vm418_vm0, %v225_v56  ;;  %1465 = vmatmul.mubr.msk.f32.gmra.mrb[6].mxu1 %vm746_vm3, %v385_v55 }
  0xa1   :  { %v276_v57 = vpop.permute.xlu1 %275  ;;  %v116_v58 = vpop.permute.xlu0 %115 }
  0xa2   :  { %vm354_vm4 = vcmp.eq.s32.totalorder %v276_v57, %v1841_v23  ;;  %vm194_vm5 = vcmp.eq.s32.totalorder %v116_v58, %v1841_v23 }
  0xa3   :  { %v386_v59 = vsel %vm354_vm4, 1.0, %v1569_v26  ;;  %v226_v60 = vsel %vm194_vm5, 1.0, %v1569_v26 }
  0xa4   :  { %1407 = vmatprep.mubr.msk.f32.mxu0 %vm418_vm0, %v226_v60  ;;  %1467 = vmatprep.mubr.msk.f32.mxu1 %vm746_vm3, %v386_v59 }
  0xa5   :  { %v279_v61 = vpop.permute.xlu1 %278  ;;  %v119_v62 = vpop.permute.xlu0 %118 }
  0xa6   :  { %vm355_vm6 = vcmp.eq.s32.totalorder %v279_v61, %v1841_v23  ;;  %vm195_vm7 = vcmp.eq.s32.totalorder %v119_v62, %v1841_v23 }
  0xa7   :  { %v387_v63 = vsel %vm355_vm6, 1.0, %v1569_v26  ;;  %v227_v0 = vsel %vm195_vm7, 1.0, %v1569_v26 }
  0xa8   :  { %1408 = vmatmul.mubr.msk.f32.gmra.mrb[8].mxu0 %vm418_vm0, %v227_v0  ;;  %1468 = vmatmul.mubr.msk.f32.gmra.mrb[8].mxu1 %vm746_vm3, %v387_v63 }
  0xa9   :  { %v282_v1 = vpop.permute.xlu1 %281  ;;  %v122_v2 = vpop.permute.xlu0 %121 }
  0xaa   :  { %vm356_vm8 = vcmp.eq.s32.totalorder %v282_v1, %v1841_v23  ;;  %vm196_vm9 = vcmp.eq.s32.totalorder %v122_v2, %v1841_v23 }
  0xab   :  { %v388_v3 = vsel %vm356_vm8, 1.0, %v1569_v26  ;;  %v228_v4 = vsel %vm196_vm9, 1.0, %v1569_v26 }
  0xac   :  { %1410 = vmatprep.mubr.msk.f32.mxu0 %vm418_vm0, %v228_v4  ;;  %1470 = vmatprep.mubr.msk.f32.mxu1 %vm746_vm3, %v388_v3 }
  0xad   :  { %v285_v5 = vpop.permute.xlu1 %284  ;;  %v125_v6 = vpop.permute.xlu0 %124 }
  0xae   :  { %vm357_vm10 = vcmp.eq.s32.totalorder %v285_v5, %v1841_v23  ;;  %vm197_vm11 = vcmp.eq.s32.totalorder %v125_v6, %v1841_v23 }
  0xaf   :  { %v389_v7 = vsel %vm357_vm10, 1.0, %v1569_v26  ;;  %v229_v8 = vsel %vm197_vm11, 1.0, %v1569_v26 }
  0xb0   :  { %1411 = vmatmul.mubr.msk.f32.gmra.mrb[10].mxu0 %vm418_vm0, %v229_v8  ;;  %1471 = vmatmul.mubr.msk.f32.gmra.mrb[10].mxu1 %vm746_vm3, %v389_v7 }
  0xb1   :  { %v288_v9 = vpop.permute.xlu1 %287  ;;  %v128_v10 = vpop.permute.xlu0 %127 }
  0xb2   :  { %vm358_vm12 = vcmp.eq.s32.totalorder %v288_v9, %v1841_v23  ;;  %vm198_vm13 = vcmp.eq.s32.totalorder %v128_v10, %v1841_v23 }
  0xb3   :  { %v390_v11 = vsel %vm358_vm12, 1.0, %v1569_v26  ;;  %v230_v12 = vsel %vm198_vm13, 1.0, %v1569_v26 }
  0xb4   :  { %1413 = vmatprep.mubr.msk.f32.mxu0 %vm418_vm0, %v230_v12  ;;  %1473 = vmatprep.mubr.msk.f32.mxu1 %vm746_vm3, %v390_v11 }
  0xb5   :  { %v291_v13 = vpop.permute.xlu1 %290  ;;  %v131_v14 = vpop.permute.xlu0 %130 }
  0xb6   :  { %vm359_vm14 = vcmp.eq.s32.totalorder %v291_v13, %v1841_v23  ;;  %vm199_vm15 = vcmp.eq.s32.totalorder %v131_v14, %v1841_v23 }
  0xb7   :  { %v391_v15 = vsel %vm359_vm14, 1.0, %v1569_v26  ;;  %v231_v16 = vsel %vm199_vm15, 1.0, %v1569_v26 }
  0xb8   :  { %1414 = vmatmul.mubr.msk.f32.gmra.mrb[12].mxu0 %vm418_vm0, %v231_v16  ;;  %1474 = vmatmul.mubr.msk.f32.gmra.mrb[12].mxu1 %vm746_vm3, %v391_v15 }
  0xb9   :  { %v294_v17 = vpop.permute.xlu1 %293  ;;  %v134_v18 = vpop.permute.xlu0 %133 }
  0xba   :  { %vm360_vm1 = vcmp.eq.s32.totalorder %v294_v17, %v1841_v23  ;;  %vm200_vm2 = vcmp.eq.s32.totalorder %v134_v18, %v1841_v23 }
  0xbb   :  { %v392_v19 = vsel %vm360_vm1, 1.0, %v1569_v26  ;;  %v232_v21 = vsel %vm200_vm2, 1.0, %v1569_v26 }
  0xbc   :  { %1416 = vmatprep.mubr.msk.f32.mxu0 %vm418_vm0, %v232_v21  ;;  %1476 = vmatprep.mubr.msk.f32.mxu1 %vm746_vm3, %v392_v19 }
  0xbd   :  { %v297_v22 = vpop.permute.xlu1 %296  ;;  %v137_v24 = vpop.permute.xlu0 %136 }
  0xbe   :  { %vm361_vm4 = vcmp.eq.s32.totalorder %v297_v22, %v1841_v23  ;;  %vm201_vm5 = vcmp.eq.s32.totalorder %v137_v24, %v1841_v23 }
  0xbf   :  { %v393_v25 = vsel %vm361_vm4, 1.0, %v1569_v26  ;;  %v233_v27 = vsel %vm201_vm5, 1.0, %v1569_v26 }
  0xc0   :  { %1417 = vmatmul.mubr.msk.f32.gmra.mrb[14].mxu0 %vm418_vm0, %v233_v27  ;;  %1477 = vmatmul.mubr.msk.f32.gmra.mrb[14].mxu1 %vm746_vm3, %v393_v25 }
  0xc1   :  { %v300_v28 = vpop.permute.xlu1 %299  ;;  %v140_v29 = vpop.permute.xlu0 %139 }
  0xc2   :  { %vm362_vm6 = vcmp.eq.s32.totalorder %v300_v28, %v1841_v23  ;;  %vm202_vm7 = vcmp.eq.s32.totalorder %v140_v29, %v1841_v23 }
  0xc3   :  { %v394_v30 = vsel %vm362_vm6, 1.0, %v1569_v26  ;;  %v234_v31 = vsel %vm202_vm7, 1.0, %v1569_v26 }
  0xc4   :  { %1419 = vmatprep.mubr.msk.f32.mxu0 %vm418_vm0, %v234_v31  ;;  %1479 = vmatprep.mubr.msk.f32.mxu1 %vm746_vm3, %v394_v30 }
  0xc5   :  { %v303_v32 = vpop.permute.xlu1 %302  ;;  %v143_v33 = vpop.permute.xlu0 %142 }
  0xc6   :  { %vm363_vm8 = vcmp.eq.s32.totalorder %v303_v32, %v1841_v23  ;;  %vm203_vm9 = vcmp.eq.s32.totalorder %v143_v33, %v1841_v23  ;;  %v2038_v33 = vld [vmem:[%s2108_s4] sm:$0x1] }
  0xc7   :  { %v395_v34 = vsel %vm363_vm8, 1.0, %v1569_v26  ;;  %v235_v35 = vsel %vm203_vm9, 1.0, %v1569_v26 }
  0xc8   :  { %1420 = vmatmul.mubr.msk.f32.gmra.mrb[16].mxu0 %vm418_vm0, %v235_v35  ;;  %1480 = vmatmul.mubr.msk.f32.gmra.mrb[16].mxu1 %vm746_vm3, %v395_v34 }
  0xc9   :  { %v306_v36 = vpop.permute.xlu1 %305  ;;  %v146_v37 = vpop.permute.xlu0 %145 }
  0xca   :  { %vm364_vm10 = vcmp.eq.s32.totalorder %v306_v36, %v1841_v23  ;;  %vm204_vm11 = vcmp.eq.s32.totalorder %v146_v37, %v1841_v23 }
  0xcb   :  { %v396_v38 = vsel %vm364_vm10, 1.0, %v1569_v26  ;;  %v236_v39 = vsel %vm204_vm11, 1.0, %v1569_v26 }
  0xcc   :  { %1422 = vmatprep.mubr.msk.f32.mxu0 %vm418_vm0, %v236_v39  ;;  %1482 = vmatprep.mubr.msk.f32.mxu1 %vm746_vm3, %v396_v38 }
  0xcd   :  { %v309_v40 = vpop.permute.xlu1 %308  ;;  %v149_v41 = vpop.permute.xlu0 %148 }
  0xce   :  { %vm365_vm12 = vcmp.eq.s32.totalorder %v309_v40, %v1841_v23  ;;  %vm205_vm13 = vcmp.eq.s32.totalorder %v149_v41, %v1841_v23 }
  0xcf   :  { %v397_v42 = vsel %vm365_vm12, 1.0, %v1569_v26  ;;  %v237_v43 = vsel %vm205_vm13, 1.0, %v1569_v26 }
  0xd0   :  { %1423 = vmatmul.mubr.msk.f32.gmra.mrb[18].mxu0 %vm418_vm0, %v237_v43  ;;  %1483 = vmatmul.mubr.msk.f32.gmra.mrb[18].mxu1 %vm746_vm3, %v397_v42 }
  0xd1   :  { %v312_v44 = vpop.permute.xlu1 %311  ;;  %v152_v45 = vpop.permute.xlu0 %151 }
  0xd2   :  { %vm366_vm14 = vcmp.eq.s32.totalorder %v312_v44, %v1841_v23  ;;  %vm206_vm15 = vcmp.eq.s32.totalorder %v152_v45, %v1841_v23 }
  0xd3   :  { %v398_v46 = vsel %vm366_vm14, 1.0, %v1569_v26  ;;  %v238_v47 = vsel %vm206_vm15, 1.0, %v1569_v26 }
  0xd4   :  { %1425 = vmatprep.mubr.msk.f32.mxu0 %vm418_vm0, %v238_v47  ;;  %1485 = vmatprep.mubr.msk.f32.mxu1 %vm746_vm3, %v398_v46 }
  0xd5   :  { %v315_v48 = vpop.permute.xlu1 %314  ;;  %v155_v49 = vpop.permute.xlu0 %154 }
  0xd6   :  { %vm367_vm1 = vcmp.eq.s32.totalorder %v315_v48, %v1841_v23  ;;  %vm207_vm2 = vcmp.eq.s32.totalorder %v155_v49, %v1841_v23 }
  0xd7   :  { %v399_v50 = vsel %vm367_vm1, 1.0, %v1569_v26  ;;  %v239_v51 = vsel %vm207_vm2, 1.0, %v1569_v26 }
  0xd8   :  { %1426 = vmatmul.mubr.msk.f32.gmra.mrb[20].mxu0 %vm418_vm0, %v239_v51  ;;  %1486 = vmatmul.mubr.msk.f32.gmra.mrb[20].mxu1 %vm746_vm3, %v399_v50 }
  0xd9   :  { %v318_v52 = vpop.permute.xlu1 %317  ;;  %v158_v53 = vpop.permute.xlu0 %157 }
  0xda   :  { %vm368_vm4 = vcmp.eq.s32.totalorder %v318_v52, %v1841_v23  ;;  %vm208_vm5 = vcmp.eq.s32.totalorder %v158_v53, %v1841_v23 }
  0xdb   :  { %v400_v54 = vsel %vm368_vm4, 1.0, %v1569_v26  ;;  %v240_v55 = vsel %vm208_vm5, 1.0, %v1569_v26 }
  0xdc   :  { %1428 = vmatprep.mubr.msk.f32.mxu0 %vm418_vm0, %v240_v55  ;;  %1488 = vmatprep.mubr.msk.f32.mxu1 %vm746_vm3, %v400_v54 }
  0xdd   :  { %v321_v56 = vpop.permute.xlu1 %320  ;;  %v161_v57 = vpop.permute.xlu0 %160 }
  0xde   :  { %vm369_vm6 = vcmp.eq.s32.totalorder %v321_v56, %v1841_v23  ;;  %vm209_vm7 = vcmp.eq.s32.totalorder %v161_v57, %v1841_v23 }
  0xdf   :  { %v401_v58 = vsel %vm369_vm6, 1.0, %v1569_v26  ;;  %v241_v59 = vsel %vm209_vm7, 1.0, %v1569_v26 }
  0xe0   :  { %1429 = vmatmul.mubr.msk.f32.gmra.mrb[22].mxu0 %vm418_vm0, %v241_v59  ;;  %1489 = vmatmul.mubr.msk.f32.gmra.mrb[22].mxu1 %vm746_vm3, %v401_v58 }
  0xe1   :  { %v324_v60 = vpop.permute.xlu1 %323  ;;  %v164_v61 = vpop.permute.xlu0 %163 }
  0xe2   :  { %vm370_vm8 = vcmp.eq.s32.totalorder %v324_v60, %v1841_v23  ;;  %vm210_vm9 = vcmp.eq.s32.totalorder %v164_v61, %v1841_v23 }
  0xe3   :  { %v402_v62 = vsel %vm370_vm8, 1.0, %v1569_v26  ;;  %v242_v63 = vsel %vm210_vm9, 1.0, %v1569_v26 }
  0xe4   :  { %1431 = vmatprep.mubr.msk.f32.mxu0 %vm418_vm0, %v242_v63  ;;  %1491 = vmatprep.mubr.msk.f32.mxu1 %vm746_vm3, %v402_v62 }
  0xe5   :  { %v327_v0 = vpop.permute.xlu1 %326  ;;  %v167_v1 = vpop.permute.xlu0 %166 }
  0xe6   :  { %vm371_vm10 = vcmp.eq.s32.totalorder %v327_v0, %v1841_v23  ;;  %vm211_vm11 = vcmp.eq.s32.totalorder %v167_v1, %v1841_v23 }
  0xe7   :  { %v403_v2 = vsel %vm371_vm10, 1.0, %v1569_v26  ;;  %v243_v3 = vsel %vm211_vm11, 1.0, %v1569_v26 }
  0xe8   :  { %1432 = vmatmul.mubr.msk.f32.gmra.mrb[24].mxu0 %vm418_vm0, %v243_v3  ;;  %1492 = vmatmul.mubr.msk.f32.gmra.mrb[24].mxu1 %vm746_vm3, %v403_v2 }
  0xe9   :  { %v330_v4 = vpop.permute.xlu1 %329  ;;  %v170_v5 = vpop.permute.xlu0 %169 }
  0xea   :  { %vm372_vm12 = vcmp.eq.s32.totalorder %v330_v4, %v1841_v23  ;;  %vm212_vm13 = vcmp.eq.s32.totalorder %v170_v5, %v1841_v23 }
  0xeb   :  { %v404_v6 = vsel %vm372_vm12, 1.0, %v1569_v26  ;;  %v244_v7 = vsel %vm212_vm13, 1.0, %v1569_v26 }
  0xec   :  { %1434 = vmatprep.mubr.msk.f32.mxu0 %vm418_vm0, %v244_v7  ;;  %1494 = vmatprep.mubr.msk.f32.mxu1 %vm746_vm3, %v404_v6 }
  0xed   :  { %v333_v8 = vpop.permute.xlu1 %332  ;;  %v173_v9 = vpop.permute.xlu0 %172 }
  0xee   :  { %vm373_vm14 = vcmp.eq.s32.totalorder %v333_v8, %v1841_v23  ;;  %vm213_vm15 = vcmp.eq.s32.totalorder %v173_v9, %v1841_v23 }
  0xef   :  { %v405_v10 = vsel %vm373_vm14, 1.0, %v1569_v26  ;;  %v245_v11 = vsel %vm213_vm15, 1.0, %v1569_v26 }
  0xf0   :  { %1435 = vmatmul.mubr.msk.f32.gmra.mrb[26].mxu0 %vm418_vm0, %v245_v11  ;;  %1495 = vmatmul.mubr.msk.f32.gmra.mrb[26].mxu1 %vm746_vm3, %v405_v10 }
  0xf1   :  { %v336_v12 = vpop.permute.xlu1 %335  ;;  %v176_v13 = vpop.permute.xlu0 %175 }
  0xf2   :  { %vm374_vm1 = vcmp.eq.s32.totalorder %v336_v12, %v1841_v23  ;;  %vm214_vm2 = vcmp.eq.s32.totalorder %v176_v13, %v1841_v23 }
  0xf3   :  { %v406_v14 = vsel %vm374_vm1, 1.0, %v1569_v26  ;;  %v246_v15 = vsel %vm214_vm2, 1.0, %v1569_v26 }
  0xf4   :  { %1437 = vmatprep.mubr.msk.f32.mxu0 %vm418_vm0, %v246_v15  ;;  %1497 = vmatprep.mubr.msk.f32.mxu1 %vm746_vm3, %v406_v14 }
  0xf5   :  { %v339_v16 = vpop.permute.xlu1 %338  ;;  %v179_v17 = vpop.permute.xlu0 %178 }
  0xf6   :  { %vm375_vm4 = vcmp.eq.s32.totalorder %v339_v16, %v1841_v23  ;;  %vm215_vm5 = vcmp.eq.s32.totalorder %v179_v17, %v1841_v23 }
  0xf7   :  { %v407_v18 = vsel %vm375_vm4, 1.0, %v1569_v26  ;;  %v247_v19 = vsel %vm215_vm5, 1.0, %v1569_v26 }
  0xf8   :  { %1438 = vmatmul.mubr.msk.f32.gmra.mrb[28].mxu0 %vm418_vm0, %v247_v19  ;;  %1498 = vmatmul.mubr.msk.f32.gmra.mrb[28].mxu1 %vm746_vm3, %v407_v18 }
  0xf9   :  { %v342_v21 = vpop.permute.xlu1 %341  ;;  %v182_v22 = vpop.permute.xlu0 %181 }
  0xfa   :  { %vm376_vm6 = vcmp.eq.s32.totalorder %v342_v21, %v1841_v23  ;;  %vm216_vm7 = vcmp.eq.s32.totalorder %v182_v22, %v1841_v23 }
  0xfb   :  { %v408_v24 = vsel %vm376_vm6, 1.0, %v1569_v26  ;;  %v248_v25 = vsel %vm216_vm7, 1.0, %v1569_v26 }
  0xfc   :  { %1440 = vmatprep.mubr.msk.f32.mxu0 %vm418_vm0, %v248_v25  ;;  %1500 = vmatprep.mubr.msk.f32.mxu1 %vm746_vm3, %v408_v24 }
  0xfd   :  { %v345_v27 = vpop.permute.xlu1 %344  ;;  %v185_v28 = vpop.permute.xlu0 %184 }
  0xfe   :  { %vm377_vm8 = vcmp.eq.s32.totalorder %v345_v27, %v1841_v23  ;;  %vm217_vm9 = vcmp.eq.s32.totalorder %v185_v28, %v1841_v23 }
  0xff   :  { %v409_v29 = vsel %vm377_vm8, 1.0, %v1569_v26  ;;  %v249_v30 = vsel %vm217_vm9, 1.0, %v1569_v26 }
 0x100   :  { %1441 = vmatmul.mubr.msk.f32.gmra.mrb[30].mxu0 %vm418_vm0, %v249_v30  ;;  %1501 = vmatmul.mubr.msk.f32.gmra.mrb[30].mxu1 %vm746_vm3, %v409_v29  ;;  %vm1196_vm0 = vcmp.lt.s32.totalorder %v88_v20, 256 }
 0x101   :  { %1377 = vmatprep.mubr.f32.mxu1 %v2038_v33 }
 0x158   :  { %v1397_v31 = vpop.f32.mrb[0].mxu0 }
 0x159   :  { %v581_v32 = vpop.f32.mrb[1].mxu0 }
 0x15c   :  { %v1457_v34 = vpop.f32.mrb[0].mxu1 }
 0x15d   :  { %v1069_v35 = vmul.f32 %v1457_v34, %v1397_v31  ;;  %v909_v23 = vpop.f32.mrb[1].mxu1 }
 0x15e   :  { %v1068_v36 = vmul.f32 %v909_v23, %v581_v32 }
 0x160   :  { %v1533_v37 = vpack.c.bf16 %v1069_v35, %v1068_v36 }
 0x163   :  { %v1400_v38 = vpop.f32.mrb[2].mxu0  ;;  %v1460_v26 = vpop.f32.mrb[2].mxu1 }
 0x164   :  { %v2041_v39 = vmul.f32 %v1460_v26, %v1400_v38  ;;  %v591_v40 = vpop.f32.mrb[3].mxu0  ;;  %v919_v41 = vpop.f32.mrb[3].mxu1 }
 0x165   :  { %v1070_v42 = vmul.f32 %v919_v41, %v591_v40 }
 0x167   :  { %v1537_v43 = vpack.c.bf16 %v2041_v39, %v1070_v42 }
 0x16b   :  { %v1403_v44 = vpop.f32.mrb[4].mxu0  ;;  %v1463_v45 = vpop.f32.mrb[4].mxu1 }
 0x16c   :  { %v2044_v46 = vmul.f32 %v1463_v45, %v1403_v44  ;;  %v601_v47 = vpop.f32.mrb[5].mxu0  ;;  %v929_v48 = vpop.f32.mrb[5].mxu1 }
 0x16d   :  { %v2046_v49 = vmul.f32 %v929_v48, %v601_v47 }
 0x16f   :  { %v1541_v50 = vpack.c.bf16 %v2044_v46, %v2046_v49 }
 0x173   :  { %v1406_v51 = vpop.f32.mrb[6].mxu0  ;;  %v1466_v52 = vpop.f32.mrb[6].mxu1 }
 0x174   :  { %v2050_v53 = vmul.f32 %v1466_v52, %v1406_v51  ;;  %v611_v54 = vpop.f32.mrb[7].mxu0  ;;  %v939_v55 = vpop.f32.mrb[7].mxu1 }
 0x175   :  { %v2052_v56 = vmul.f32 %v939_v55, %v611_v54 }
 0x177   :  { %v1545_v57 = vpack.c.bf16 %v2050_v53, %v2052_v56 }
 0x17b   :  { %v1409_v58 = vpop.f32.mrb[8].mxu0  ;;  %v1469_v59 = vpop.f32.mrb[8].mxu1 }
 0x17c   :  { %v2056_v60 = vmul.f32 %v1469_v59, %v1409_v58  ;;  %v621_v61 = vpop.f32.mrb[9].mxu0  ;;  %v949_v62 = vpop.f32.mrb[9].mxu1 }
 0x17d   :  { %v2058_v63 = vmul.f32 %v949_v62, %v621_v61 }
 0x17f   :  { %v1549_v0 = vpack.c.bf16 %v2056_v60, %v2058_v63 }
 0x183   :  { %v1412_v1 = vpop.f32.mrb[10].mxu0  ;;  %v1472_v2 = vpop.f32.mrb[10].mxu1 }
 0x184   :  { %v2062_v3 = vmul.f32 %v1472_v2, %v1412_v1  ;;  %v631_v4 = vpop.f32.mrb[11].mxu0  ;;  %v959_v5 = vpop.f32.mrb[11].mxu1 }
 0x185   :  { %v2064_v6 = vmul.f32 %v959_v5, %v631_v4 }
 0x187   :  { %v1553_v7 = vpack.c.bf16 %v2062_v3, %v2064_v6  ;;  %v1570_v6 = vmov 1966171168  }
 0x18b   :  { %v1415_v8 = vpop.f32.mrb[12].mxu0  ;;  %v1475_v9 = vpop.f32.mrb[12].mxu1 }
 0x18c   :  { %v2068_v10 = vmul.f32 %v1475_v9, %v1415_v8  ;;  %v641_v11 = vpop.f32.mrb[13].mxu0  ;;  %v969_v12 = vpop.f32.mrb[13].mxu1 }
 0x18d   :  { %v2070_v13 = vmul.f32 %v969_v12, %v641_v11 }
 0x18f   :  { %v1557_v14 = vpack.c.bf16 %v2068_v10, %v2070_v13  ;;  %v1102_v10 = vstv %s2109_s5 }
 0x193   :  { %v1418_v15 = vpop.f32.mrb[14].mxu0  ;;  %v1478_v16 = vpop.f32.mrb[14].mxu1 }
 0x194   :  { %v2074_v17 = vmul.f32 %v1478_v16, %v1418_v15  ;;  %v651_v18 = vpop.f32.mrb[15].mxu0  ;;  %v979_v19 = vpop.f32.mrb[15].mxu1 }
 0x195   :  { %v2076_v21 = vmul.f32 %v979_v19, %v651_v18 }
 0x197   :  { %v1561_v22 = vpack.c.bf16 %v2074_v17, %v2076_v21 }
 0x19b   :  { %v1421_v24 = vpop.f32.mrb[16].mxu0  ;;  %v1481_v25 = vpop.f32.mrb[16].mxu1 }
 0x19c   :  { %v1085_v27 = vmul.f32 %v1481_v25, %v1421_v24  ;;  %v661_v28 = vpop.f32.mrb[17].mxu0  ;;  %v989_v29 = vpop.f32.mrb[17].mxu1 }
 0x19d   :  { %v1084_v30 = vmul.f32 %v989_v29, %v661_v28 }
 0x19f   :  { %v1531_v31 = vpack.c.bf16 %v1085_v27, %v1084_v30  ;;  %v1183_v27 = vshrl.u32 %v88_v20, 7 }
 0x1a1   :  { %1532 = vmatprep.subr.bf16.mxu1 %v1531_v31 }
 0x1a2   :  { %1534 = vmatpush3.bf16.xpose.msra.mxu1 %v1533_v37 }
 0x1a3   :  { %v1424_v32 = vpop.f32.mrb[18].mxu0  ;;  %v1484_v34 = vpop.f32.mrb[18].mxu1 }
 0x1a4   :  { %v1087_v35 = vmul.f32 %v1484_v34, %v1424_v32  ;;  %v671_v23 = vpop.f32.mrb[19].mxu0  ;;  %v999_v36 = vpop.f32.mrb[19].mxu1 }
 0x1a5   :  { %v1086_v38 = vmul.f32 %v999_v36, %v671_v23 }
 0x1a7   :  { %v1535_v26 = vpack.c.bf16 %v1087_v35, %v1086_v38 }
 0x1a9   :  { %1536 = vmatprep.subr.bf16.mxu1 %v1535_v26 }
 0x1aa   :  { %1538 = vmatpush3.bf16.xpose.msra.mxu1 %v1537_v43 }
 0x1ab   :  { %v1427_v39 = vpop.f32.mrb[20].mxu0  ;;  %v1487_v40 = vpop.f32.mrb[20].mxu1 }
 0x1ac   :  { %v1089_v41 = vmul.f32 %v1487_v40, %v1427_v39  ;;  %v681_v42 = vpop.f32.mrb[21].mxu0  ;;  %v1009_v44 = vpop.f32.mrb[21].mxu1 }
 0x1ad   :  { %v1088_v45 = vmul.f32 %v1009_v44, %v681_v42 }
 0x1af   :  { %v1539_v46 = vpack.c.bf16 %v1089_v41, %v1088_v45 }
 0x1b1   :  { %1540 = vmatprep.subr.bf16.mxu1 %v1539_v46 }
 0x1b2   :  { %1542 = vmatpush3.bf16.xpose.msra.mxu1 %v1541_v50 }
 0x1b3   :  { %v1430_v47 = vpop.f32.mrb[22].mxu0  ;;  %v1490_v37 = vpop.f32.mrb[22].mxu1 }
 0x1b4   :  { %v1091_v48 = vmul.f32 %v1490_v37, %v1430_v47  ;;  %v691_v49 = vpop.f32.mrb[23].mxu0  ;;  %v1019_v51 = vpop.f32.mrb[23].mxu1 }
 0x1b5   :  { %v1090_v52 = vmul.f32 %v1019_v51, %v691_v49 }
 0x1b7   :  { %v1543_v54 = vpack.c.bf16 %v1091_v48, %v1090_v52 }
 0x1b9   :  { %1544 = vmatprep.subr.bf16.mxu1 %v1543_v54 }
 0x1ba   :  { %1546 = vmatpush3.bf16.xpose.msra.mxu1 %v1545_v57 }
 0x1bb   :  { %v1433_v43 = vpop.f32.mrb[24].mxu0  ;;  %v1493_v55 = vpop.f32.mrb[24].mxu1 }
 0x1bc   :  { %v1093_v58 = vmul.f32 %v1493_v55, %v1433_v43  ;;  %v701_v59 = vpop.f32.mrb[25].mxu0  ;;  %v1029_v61 = vpop.f32.mrb[25].mxu1 }
 0x1bd   :  { %v1092_v62 = vmul.f32 %v1029_v61, %v701_v59 }
 0x1bf   :  { %v1547_v1 = vpack.c.bf16 %v1093_v58, %v1092_v62 }
 0x1c1   :  { %1548 = vmatprep.subr.bf16.mxu1 %v1547_v1 }
 0x1c2   :  { %1550 = vmatpush3.bf16.xpose.msra.mxu1 %v1549_v0 }
 0x1c3   :  { %v1436_v50 = vpop.f32.mrb[26].mxu0  ;;  %v1496_v2 = vpop.f32.mrb[26].mxu1 }
 0x1c4   :  { %v1095_v4 = vmul.f32 %v1496_v2, %v1436_v50  ;;  %v711_v5 = vpop.f32.mrb[27].mxu0  ;;  %v1039_v8 = vpop.f32.mrb[27].mxu1 }
 0x1c5   :  { %v1094_v9 = vmul.f32 %v1039_v8, %v711_v5 }
 0x1c7   :  { %v1551_v53 = vpack.c.bf16 %v1095_v4, %v1094_v9 }
 0x1c9   :  { %1552 = vmatprep.subr.bf16.mxu1 %v1551_v53 }
 0x1ca   :  { %1554 = vmatpush3.bf16.xpose.msra.mxu1 %v1553_v7  ;;  %v1180_v7 = vunpack.c.l.s4 %v1570_v6 }
 0x1cb   :  { %v1439_v56 = vpop.f32.mrb[28].mxu0  ;;  %v1499_v57 = vpop.f32.mrb[28].mxu1 }
 0x1cc   :  { %v1097_v11 = vmul.f32 %v1499_v57, %v1439_v56  ;;  %v721_v12 = vpop.f32.mrb[29].mxu0  ;;  %v1049_v15 = vpop.f32.mrb[29].mxu1 }
 0x1cd   :  { %v1096_v16 = vmul.f32 %v1049_v15, %v721_v12 }
 0x1cf   :  { %v1555_v60 = vpack.c.bf16 %v1097_v11, %v1096_v16 }
 0x1d1   :  { %1556 = vmatprep.subr.bf16.mxu1 %v1555_v60 }
 0x1d2   :  { %1558 = vmatpush3.bf16.xpose.msra.mxu1 %v1557_v14  ;;  %v1181_v14 = vunpack.c.0.s8 %v1180_v7 }
 0x1d3   :  { %v1442_v63 = vpop.f32.mrb[30].mxu0  ;;  %v1502_v0 = vpop.f32.mrb[30].mxu1 }
 0x1d4   :  { %v1099_v18 = vmul.f32 %v1502_v0, %v1442_v63  ;;  %v731_v19 = vpop.f32.mrb[31].mxu0  ;;  %v1059_v24 = vpop.f32.mrb[31].mxu1  ;;  %v1184_v34 = vsub.s32 %v1181_v14, %v1183_v27 }
 0x1d5   :  { %v1098_v25 = vmul.f32 %v1059_v24, %v731_v19 }
 0x1d7   :  { %v1559_v3 = vpack.c.bf16 %v1099_v18, %v1098_v25 }
 0x1d9   :  { %1560 = vmatprep.subr.bf16.mxu1 %v1559_v3 }
 0x1da   :  { %1562 = vmatpush3.bf16.xpose.msra.mxu1 %v1561_v22 }
 0x1e1   :  { %1378 = vmatmul.mubr.f32.vlgmr.msra.gmra.mrb[32].mxu1 %v2038_v33 }
 0x2b4   :  { %v1169_v13 = vpop.f32.mrb[32].mxu1 }
 0x2b5   :  { %v1170_v28 = vadd.f32 %v1169_v13, %v1102_v10  ;;  %v1171_v29 = vpop.f32.mrb[33].mxu1 }
 0x2b6   :  { %v1172_v30 = vadd.f32 %v1171_v29, %v1102_v10 }
 0x2b7   :  { %v1174_v31 = vmax.f32 %v1170_v28, 0.0 }
 0x2b8   :  { %v1175_v32 = vmax.f32 %v1172_v30, 0.0 }
 0x2ba   :  { %v1178_v17 = vcombine.low %v1174_v31, %v1175_v32 }
 0x2bc   :  { %v1185_v21 = vrot.slane %v1178_v17, %v1184_v34 }
 0x2be   :  { %v1192_v33 = vrot.slane %v1185_v21, %v1184_v34 }
 0x2c0   :  { %1198 = vst.msk [vmem:[%s2110_s6] sm:$0x3] %vm1196_vm0, %v1192_v33 }

</bundles_post_ra>
